<compile_context>
chip_gen: v5e
topology: v5e:2x2
jax: 0.10.0
libtpu: 0.0.40
codegen_flags: <defaults>
</compile_context>

<pallas_src>
import functools

import jax
import jax.numpy as jnp
from jax.experimental import pallas as pl
from jax.experimental.pallas import tpu as pltpu


def _weight_norm(v, g):
    """PyTorch weight_norm (dim=0): w = g * v / ||v||, norm over all dims but 0."""
    norm = jnp.sqrt(jnp.sum(v * v, axis=tuple(range(1, v.ndim)), keepdims=True))
    return g.reshape((-1,) + (1,) * (v.ndim - 1)) * v / norm


def _temporal_block_kernel(x_ref, w1_ref, b1_ref, w2_ref, b2_ref, *rest,
                           kernel_size, dilation, pad, c_out, l, has_downsample):
    if has_downsample:
        wd_ref, bd_ref, o_ref, xp_ref, h1p_ref = rest
    else:
        o_ref, xp_ref, h1p_ref = rest

    x = x_ref[...].astype(jnp.float32)                       # (C_in, L)

    # ---- conv1: dilated *causal* conv. Left-pad into VMEM scratch; the
    # trailing ("chomped") outputs are never computed.
    xp_ref[...] = jnp.zeros_like(xp_ref)
    xp_ref[:, pad:] = x

    acc = jnp.zeros((c_out, l), jnp.float32)
    for j in range(kernel_size):                              # static unroll over taps
        off = j * dilation
        acc = acc + jnp.dot(w1_ref[j], xp_ref[:, off:off + l],
                            preferred_element_type=jnp.float32)
    h1 = jnp.maximum(acc + b1_ref[...], 0.0)                  # relu1
    # TODO(synk): dropout1/dropout2 are identity here (eval-mode forward); a
    # training-mode version would use pltpu.prng_seed + pltpu.prng_random_bits.

    # ---- conv2 on h1, same causal-padding scheme via a second scratch buffer.
    h1p_ref[...] = jnp.zeros_like(h1p_ref)
    h1p_ref[:, pad:] = h1

    acc = jnp.zeros((c_out, l), jnp.float32)
    for j in range(kernel_size):
        off = j * dilation
        acc = acc + jnp.dot(w2_ref[j], h1p_ref[:, off:off + l],
                            preferred_element_type=jnp.float32)
    h2 = jnp.maximum(acc + b2_ref[...], 0.0)                  # relu2

    # ---- residual branch (1x1 conv iff channel counts differ) + final relu.
    if has_downsample:
        res = jnp.dot(wd_ref[...], x, preferred_element_type=jnp.float32) + bd_ref[...]
    else:
        res = x
    o_ref[...] = jnp.maximum(h2 + res, 0.0).astype(o_ref.dtype)


def temporal_block(x, params, *, kernel_size, stride, dilation):
    """Fused Pallas forward of PyTorch TemporalBlock (eval mode)."""
    assert stride == 1, "TCN TemporalBlock uses stride=1"
    n, c_in, l = x.shape
    c_out = params["w1_v"].shape[0]
    pad = (kernel_size - 1) * dilation                 # == PyTorch `padding` arg
    has_down = params.get("wd") is not None
    if not has_down:
        assert c_in == c_out, "identity residual requires n_inputs == n_outputs"

    # Weight-norm reparameterization + tap-major (K, C_out, C_*) layout.
    w1 = jnp.transpose(_weight_norm(params["w1_v"], params["w1_g"]), (2, 0, 1)).astype(jnp.float32)
    w2 = jnp.transpose(_weight_norm(params["w2_v"], params["w2_g"]), (2, 0, 1)).astype(jnp.float32)
    b1c = params["b1"].reshape(c_out, 1).astype(jnp.float32)
    b2c = params["b2"].reshape(c_out, 1).astype(jnp.float32)

    kernel = functools.partial(
        _temporal_block_kernel, kernel_size=kernel_size, dilation=dilation,
        pad=pad, c_out=c_out, l=l, has_downsample=has_down)

    in_specs = [
        pl.BlockSpec((None, c_in, l), lambda b: (b, 0, 0)),              # x, per batch
        pl.BlockSpec((kernel_size, c_out, c_in), lambda b: (0, 0, 0)),   # w1 taps
        pl.BlockSpec((c_out, 1), lambda b: (0, 0)),                      # b1
        pl.BlockSpec((kernel_size, c_out, c_out), lambda b: (0, 0, 0)),  # w2 taps
        pl.BlockSpec((c_out, 1), lambda b: (0, 0)),                      # b2
    ]
    args = [x, w1, b1c, w2, b2c]
    if has_down:
        in_specs += [pl.BlockSpec((c_out, c_in), lambda b: (0, 0)),      # downsample W
                     pl.BlockSpec((c_out, 1), lambda b: (0, 0))]         # downsample b
        args += [params["wd"].astype(jnp.float32),
                 params["bd"].reshape(c_out, 1).astype(jnp.float32)]

    return pl.pallas_call(
        kernel,
        out_shape=jax.ShapeDtypeStruct((n, c_out, l), x.dtype),
        grid_spec=pltpu.PrefetchScalarGridSpec(
            num_scalar_prefetch=0,
            grid=(n,),
            in_specs=in_specs,
            out_specs=pl.BlockSpec((None, c_out, l), lambda b: (b, 0, 0)),
            scratch_shapes=[pltpu.VMEM((c_in, l + pad), jnp.float32),    # left-padded x
                            pltpu.VMEM((c_out, l + pad), jnp.float32)],  # left-padded h1
        ),
        compiler_params=pltpu.CompilerParams(
            dimension_semantics=("parallel",),   # batch shards across v7x's 2 TCs
        ),
    )(*args)


def _temporal_block_ref(x, params, *, kernel_size, stride, dilation):
    """Pure-JAX reference (matches PyTorch TemporalBlock eval-mode forward)."""
    pad = (kernel_size - 1) * dilation
    l = x.shape[-1]
    w1 = _weight_norm(params["w1_v"], params["w1_g"])
    w2 = _weight_norm(params["w2_v"], params["w2_g"])
    dn = ("NCH", "OIH", "NCH")

    def conv(inp, w, b):
        y = jax.lax.conv_general_dilated(
            inp, w, window_strides=(stride,), padding=[(pad, pad)],
            rhs_dilation=(dilation,), dimension_numbers=dn)
        return y + b[None, :, None]

    h1 = jax.nn.relu(conv(x, w1, params["b1"])[:, :, :l])          # conv1+chomp+relu
    h2 = jax.nn.relu(conv(h1, w2, params["b2"])[:, :, :l])         # conv2+chomp+relu
    if params.get("wd") is not None:
        res = jnp.einsum("oc,ncl->nol", params["wd"], x) + params["bd"][None, :, None]
    else:
        res = x
    return jax.nn.relu(h2 + res)


if __name__ == "__main__":
    key = jax.random.PRNGKey(0)
    keys = jax.random.split(key, 9)

    batch, n_inputs, n_outputs, length = 2, 4, 8, 16
    kernel_size, stride, dilation = 3, 1, 2
    # padding = (kernel_size - 1) * dilation, the standard TCN setting.

    x = jax.random.normal(keys[0], (batch, n_inputs, length), dtype=jnp.float32)

    params = {
        "w1_v": 0.01 * jax.random.normal(keys[1], (n_outputs, n_inputs, kernel_size), jnp.float32),
        "w1_g": 0.5 + jnp.abs(jax.random.normal(keys[2], (n_outputs,), jnp.float32)),
        "b1":   0.01 * jax.random.normal(keys[3], (n_outputs,), jnp.float32),
        "w2_v": 0.01 * jax.random.normal(keys[4], (n_outputs, n_outputs, kernel_size), jnp.float32),
        "w2_g": 0.5 + jnp.abs(jax.random.normal(keys[5], (n_outputs,), jnp.float32)),
        "b2":   0.01 * jax.random.normal(keys[6], (n_outputs,), jnp.float32),
        # n_inputs != n_outputs -> downsample 1x1 conv is present (as in PyTorch).
        "wd":   0.01 * jax.random.normal(keys[7], (n_outputs, n_inputs), jnp.float32),
        "bd":   0.01 * jax.random.normal(keys[8], (n_outputs,), jnp.float32),
    }

    out = temporal_block(x, params, kernel_size=kernel_size, stride=stride, dilation=dilation)
    out = jax.block_until_ready(out)

    ref = _temporal_block_ref(x, params, kernel_size=kernel_size, stride=stride, dilation=dilation)
    assert out.shape == (batch, n_outputs, length), out.shape
    assert out.dtype == x.dtype
    assert jnp.allclose(out, ref, atol=1e-4, rtol=1e-3), float(jnp.max(jnp.abs(out - ref)))

    print("KERNEL_OK")
</pallas_src>

<mosaic_0001>
module attributes {stable_mosaic.version = 11 : i64} {
  func.func @_temporal_block_kernel(%arg0: i32, %arg1: memref<1x4x16xf32, #tpu.memory_space<vmem>>, %arg2: memref<3x8x4xf32, #tpu.memory_space<vmem>>, %arg3: memref<8x1xf32, #tpu.memory_space<vmem>>, %arg4: memref<3x8x8xf32, #tpu.memory_space<vmem>>, %arg5: memref<8x1xf32, #tpu.memory_space<vmem>>, %arg6: memref<8x4xf32, #tpu.memory_space<vmem>>, %arg7: memref<8x1xf32, #tpu.memory_space<vmem>>, %arg8: memref<1x8x16xf32, #tpu.memory_space<vmem>>, %arg9: memref<4x20xf32, #tpu.memory_space<vmem>>, %arg10: memref<8x20xf32, #tpu.memory_space<vmem>>) attributes {dimension_semantics = [#tpu.dimension_semantics<parallel>], iteration_bounds = array<i64: 2>, scalar_prefetch = 0 : i64, scratch_operands = 2 : i64, tpu.core_type = #tpu.core_type<tc>, window_params = [{transform_indices = @transform_0, window_bounds = array<i64: 1, 4, 16>}, {pipeline_mode = #tpu.pipeline_mode<synchronous>, transform_indices = @transform_1, window_bounds = array<i64: 3, 8, 4>}, {pipeline_mode = #tpu.pipeline_mode<synchronous>, transform_indices = @transform_2, window_bounds = array<i64: 8, 1>}, {pipeline_mode = #tpu.pipeline_mode<synchronous>, transform_indices = @transform_3, window_bounds = array<i64: 3, 8, 8>}, {pipeline_mode = #tpu.pipeline_mode<synchronous>, transform_indices = @transform_4, window_bounds = array<i64: 8, 1>}, {pipeline_mode = #tpu.pipeline_mode<synchronous>, transform_indices = @transform_5, window_bounds = array<i64: 8, 4>}, {pipeline_mode = #tpu.pipeline_mode<synchronous>, transform_indices = @transform_6, window_bounds = array<i64: 8, 1>}, {transform_indices = @transform_7, window_bounds = array<i64: 1, 8, 16>}]} {
    %c0 = arith.constant 0 : index
    %c0_0 = arith.constant 0 : index
    %c0_1 = arith.constant 0 : index
    %0 = vector.load %arg1[%c0, %c0_0, %c0_1] : memref<1x4x16xf32, #tpu.memory_space<vmem>>, vector<1x4x16xf32>
    %1 = vector.shape_cast %0 : vector<1x4x16xf32> to vector<4x16xf32>
    %cst = arith.constant 0.000000e+00 : f32
    %2 = vector.broadcast %cst : f32 to vector<4x20xf32>
    %c0_2 = arith.constant 0 : index
    %c0_3 = arith.constant 0 : index
    %3 = vector.load %arg9[%c0_2, %c0_3] : memref<4x20xf32, #tpu.memory_space<vmem>>, vector<4x20xf32>
    tpu.vector_store %arg9[%c0_2, %c0_3], %2 {strides = array<i32>} : memref<4x20xf32, #tpu.memory_space<vmem>>, vector<4x20xf32>,
    %c0_4 = arith.constant 0 : index
    %c4 = arith.constant 4 : index
    %4 = vector.load %arg9[%c0_4, %c4] : memref<4x20xf32, #tpu.memory_space<vmem>>, vector<4x16xf32>
    tpu.vector_store %arg9[%c0_4, %c4], %1 {strides = array<i32>} : memref<4x20xf32, #tpu.memory_space<vmem>>, vector<4x16xf32>,
    %cst_5 = arith.constant 0.000000e+00 : f32
    %5 = vector.broadcast %cst_5 : f32 to vector<8x16xf32>
    %c0_6 = arith.constant 0 : index
    %c0_7 = arith.constant 0 : index
    %c0_8 = arith.constant 0 : index
    %6 = vector.load %arg2[%c0_6, %c0_7, %c0_8] : memref<3x8x4xf32, #tpu.memory_space<vmem>>, vector<1x8x4xf32>
    %7 = vector.shape_cast %6 : vector<1x8x4xf32> to vector<8x4xf32>
    %c0_9 = arith.constant 0 : index
    %c0_10 = arith.constant 0 : index
    %8 = vector.load %arg9[%c0_9, %c0_10] : memref<4x20xf32, #tpu.memory_space<vmem>>, vector<4x16xf32>
    %cst_11 = arith.constant dense<0.000000e+00> : vector<8x16xf32>
    %9 = tpu.matmul %7, %8, %cst_11 {dimension_numbers = #tpu.dot_dimension_numbers<[1], [0], [0], [1], [0, 0, 1, 1], [], []>} : vector<8x4xf32>, vector<4x16xf32>, vector<8x16xf32> -> vector<8x16xf32>
    %10 = arith.addf %5, %9 : vector<8x16xf32>
    %c1 = arith.constant 1 : index
    %c0_12 = arith.constant 0 : index
    %c0_13 = arith.constant 0 : index
    %11 = vector.load %arg2[%c1, %c0_12, %c0_13] : memref<3x8x4xf32, #tpu.memory_space<vmem>>, vector<1x8x4xf32>
    %12 = vector.shape_cast %11 : vector<1x8x4xf32> to vector<8x4xf32>
    %c0_14 = arith.constant 0 : index
    %c2 = arith.constant 2 : index
    %13 = vector.load %arg9[%c0_14, %c2] : memref<4x20xf32, #tpu.memory_space<vmem>>, vector<4x16xf32>
    %cst_15 = arith.constant dense<0.000000e+00> : vector<8x16xf32>
    %14 = tpu.matmul %12, %13, %cst_15 {dimension_numbers = #tpu.dot_dimension_numbers<[1], [0], [0], [1], [0, 0, 1, 1], [], []>} : vector<8x4xf32>, vector<4x16xf32>, vector<8x16xf32> -> vector<8x16xf32>
    %15 = arith.addf %10, %14 : vector<8x16xf32>
    %c2_16 = arith.constant 2 : index
    %c0_17 = arith.constant 0 : index
    %c0_18 = arith.constant 0 : index
    %16 = vector.load %arg2[%c2_16, %c0_17, %c0_18] : memref<3x8x4xf32, #tpu.memory_space<vmem>>, vector<1x8x4xf32>
    %17 = vector.shape_cast %16 : vector<1x8x4xf32> to vector<8x4xf32>
    %c0_19 = arith.constant 0 : index
    %c4_20 = arith.constant 4 : index
    %18 = vector.load %arg9[%c0_19, %c4_20] : memref<4x20xf32, #tpu.memory_space<vmem>>, vector<4x16xf32>
    %cst_21 = arith.constant dense<0.000000e+00> : vector<8x16xf32>
    %19 = tpu.matmul %17, %18, %cst_21 {dimension_numbers = #tpu.dot_dimension_numbers<[1], [0], [0], [1], [0, 0, 1, 1], [], []>} : vector<8x4xf32>, vector<4x16xf32>, vector<8x16xf32> -> vector<8x16xf32>
    %20 = arith.addf %15, %19 : vector<8x16xf32>
    %c0_22 = arith.constant 0 : index
    %c0_23 = arith.constant 0 : index
    %21 = vector.load %arg3[%c0_22, %c0_23] : memref<8x1xf32, #tpu.memory_space<vmem>>, vector<8x1xf32>
    %22 = vector.broadcast %21 : vector<8x1xf32> to vector<8x16xf32>
    %23 = arith.addf %20, %22 : vector<8x16xf32>
    %cst_24 = arith.constant 0.000000e+00 : f32
    %24 = vector.broadcast %cst_24 : f32 to vector<8x16xf32>
    %25 = arith.maximumf %23, %24 : vector<8x16xf32>
    %cst_25 = arith.constant 0.000000e+00 : f32
    %26 = vector.broadcast %cst_25 : f32 to vector<8x20xf32>
    %c0_26 = arith.constant 0 : index
    %c0_27 = arith.constant 0 : index
    %27 = vector.load %arg10[%c0_26, %c0_27] : memref<8x20xf32, #tpu.memory_space<vmem>>, vector<8x20xf32>
    tpu.vector_store %arg10[%c0_26, %c0_27], %26 {strides = array<i32>} : memref<8x20xf32, #tpu.memory_space<vmem>>, vector<8x20xf32>,
    %c0_28 = arith.constant 0 : index
    %c4_29 = arith.constant 4 : index
    %28 = vector.load %arg10[%c0_28, %c4_29] : memref<8x20xf32, #tpu.memory_space<vmem>>, vector<8x16xf32>
    tpu.vector_store %arg10[%c0_28, %c4_29], %25 {strides = array<i32>} : memref<8x20xf32, #tpu.memory_space<vmem>>, vector<8x16xf32>,
    %cst_30 = arith.constant 0.000000e+00 : f32
    %29 = vector.broadcast %cst_30 : f32 to vector<8x16xf32>
    %c0_31 = arith.constant 0 : index
    %c0_32 = arith.constant 0 : index
    %c0_33 = arith.constant 0 : index
    %30 = vector.load %arg4[%c0_31, %c0_32, %c0_33] : memref<3x8x8xf32, #tpu.memory_space<vmem>>, vector<1x8x8xf32>
    %31 = vector.shape_cast %30 : vector<1x8x8xf32> to vector<8x8xf32>
    %c0_34 = arith.constant 0 : index
    %c0_35 = arith.constant 0 : index
    %32 = vector.load %arg10[%c0_34, %c0_35] : memref<8x20xf32, #tpu.memory_space<vmem>>, vector<8x16xf32>
    %cst_36 = arith.constant dense<0.000000e+00> : vector<8x16xf32>
    %33 = tpu.matmul %31, %32, %cst_36 {dimension_numbers = #tpu.dot_dimension_numbers<[1], [0], [0], [1], [0, 0, 1, 1], [], []>} : vector<8x8xf32>, vector<8x16xf32>, vector<8x16xf32> -> vector<8x16xf32>
    %34 = arith.addf %29, %33 : vector<8x16xf32>
    %c1_37 = arith.constant 1 : index
    %c0_38 = arith.constant 0 : index
    %c0_39 = arith.constant 0 : index
    %35 = vector.load %arg4[%c1_37, %c0_38, %c0_39] : memref<3x8x8xf32, #tpu.memory_space<vmem>>, vector<1x8x8xf32>
    %36 = vector.shape_cast %35 : vector<1x8x8xf32> to vector<8x8xf32>
    %c0_40 = arith.constant 0 : index
    %c2_41 = arith.constant 2 : index
    %37 = vector.load %arg10[%c0_40, %c2_41] : memref<8x20xf32, #tpu.memory_space<vmem>>, vector<8x16xf32>
    %cst_42 = arith.constant dense<0.000000e+00> : vector<8x16xf32>
    %38 = tpu.matmul %36, %37, %cst_42 {dimension_numbers = #tpu.dot_dimension_numbers<[1], [0], [0], [1], [0, 0, 1, 1], [], []>} : vector<8x8xf32>, vector<8x16xf32>, vector<8x16xf32> -> vector<8x16xf32>
    %39 = arith.addf %34, %38 : vector<8x16xf32>
    %c2_43 = arith.constant 2 : index
    %c0_44 = arith.constant 0 : index
    %c0_45 = arith.constant 0 : index
    %40 = vector.load %arg4[%c2_43, %c0_44, %c0_45] : memref<3x8x8xf32, #tpu.memory_space<vmem>>, vector<1x8x8xf32>
    %41 = vector.shape_cast %40 : vector<1x8x8xf32> to vector<8x8xf32>
    %c0_46 = arith.constant 0 : index
    %c4_47 = arith.constant 4 : index
    %42 = vector.load %arg10[%c0_46, %c4_47] : memref<8x20xf32, #tpu.memory_space<vmem>>, vector<8x16xf32>
    %cst_48 = arith.constant dense<0.000000e+00> : vector<8x16xf32>
    %43 = tpu.matmul %41, %42, %cst_48 {dimension_numbers = #tpu.dot_dimension_numbers<[1], [0], [0], [1], [0, 0, 1, 1], [], []>} : vector<8x8xf32>, vector<8x16xf32>, vector<8x16xf32> -> vector<8x16xf32>
    %44 = arith.addf %39, %43 : vector<8x16xf32>
    %c0_49 = arith.constant 0 : index
    %c0_50 = arith.constant 0 : index
    %45 = vector.load %arg5[%c0_49, %c0_50] : memref<8x1xf32, #tpu.memory_space<vmem>>, vector<8x1xf32>
    %46 = vector.broadcast %45 : vector<8x1xf32> to vector<8x16xf32>
    %47 = arith.addf %44, %46 : vector<8x16xf32>
    %cst_51 = arith.constant 0.000000e+00 : f32
    %48 = vector.broadcast %cst_51 : f32 to vector<8x16xf32>
    %49 = arith.maximumf %47, %48 : vector<8x16xf32>
    %c0_52 = arith.constant 0 : index
    %c0_53 = arith.constant 0 : index
    %50 = vector.load %arg6[%c0_52, %c0_53] : memref<8x4xf32, #tpu.memory_space<vmem>>, vector<8x4xf32>
    %cst_54 = arith.constant dense<0.000000e+00> : vector<8x16xf32>
    %51 = tpu.matmul %50, %1, %cst_54 {dimension_numbers = #tpu.dot_dimension_numbers<[1], [0], [0], [1], [0, 0, 1, 1], [], []>} : vector<8x4xf32>, vector<4x16xf32>, vector<8x16xf32> -> vector<8x16xf32>
    %c0_55 = arith.constant 0 : index
    %c0_56 = arith.constant 0 : index
    %52 = vector.load %arg7[%c0_55, %c0_56] : memref<8x1xf32, #tpu.memory_space<vmem>>, vector<8x1xf32>
    %53 = vector.broadcast %52 : vector<8x1xf32> to vector<8x16xf32>
    %54 = arith.addf %51, %53 : vector<8x16xf32>
    %55 = arith.addf %49, %54 : vector<8x16xf32>
    %cst_57 = arith.constant 0.000000e+00 : f32
    %56 = vector.broadcast %cst_57 : f32 to vector<8x16xf32>
    %57 = arith.maximumf %55, %56 : vector<8x16xf32>
    %c0_58 = arith.constant 0 : index
    %c0_59 = arith.constant 0 : index
    %c0_60 = arith.constant 0 : index
    %58 = vector.load %arg8[%c0_58, %c0_59, %c0_60] : memref<1x8x16xf32, #tpu.memory_space<vmem>>, vector<1x8x16xf32>
    %59 = vector.shape_cast %58 : vector<1x8x16xf32> to vector<8x16xf32>
    %60 = vector.shape_cast %57 : vector<8x16xf32> to vector<1x8x16xf32>
    tpu.vector_store %arg8[%c0_58, %c0_59, %c0_60], %60 {strides = array<i32>} : memref<1x8x16xf32, #tpu.memory_space<vmem>>, vector<1x8x16xf32>,
    return
  }
  func.func @transform_0(%arg0: i32) -> (i32, i32, i32) {
    %c0_i32 = arith.constant 0 : i32
    %c0_i32_0 = arith.constant 0 : i32
    %c0_i32_1 = arith.constant 0 : i32
    return %arg0, %c0_i32, %c0_i32_0 : i32, i32, i32
  }
  func.func @transform_1(%arg0: i32) -> (i32, i32, i32) {
    %c0_i32 = arith.constant 0 : i32
    %c0_i32_0 = arith.constant 0 : i32
    %c0_i32_1 = arith.constant 0 : i32
    %c0_i32_2 = arith.constant 0 : i32
    return %c0_i32, %c0_i32_0, %c0_i32_1 : i32, i32, i32
  }
  func.func @transform_2(%arg0: i32) -> (i32, i32) {
    %c0_i32 = arith.constant 0 : i32
    %c0_i32_0 = arith.constant 0 : i32
    %c0_i32_1 = arith.constant 0 : i32
    return %c0_i32, %c0_i32_0 : i32, i32
  }
  func.func @transform_3(%arg0: i32) -> (i32, i32, i32) {
    %c0_i32 = arith.constant 0 : i32
    %c0_i32_0 = arith.constant 0 : i32
    %c0_i32_1 = arith.constant 0 : i32
    %c0_i32_2 = arith.constant 0 : i32
    return %c0_i32, %c0_i32_0, %c0_i32_1 : i32, i32, i32
  }
  func.func @transform_4(%arg0: i32) -> (i32, i32) {
    %c0_i32 = arith.constant 0 : i32
    %c0_i32_0 = arith.constant 0 : i32
    %c0_i32_1 = arith.constant 0 : i32
    return %c0_i32, %c0_i32_0 : i32, i32
  }
  func.func @transform_5(%arg0: i32) -> (i32, i32) {
    %c0_i32 = arith.constant 0 : i32
    %c0_i32_0 = arith.constant 0 : i32
    %c0_i32_1 = arith.constant 0 : i32
    return %c0_i32, %c0_i32_0 : i32, i32
  }
  func.func @transform_6(%arg0: i32) -> (i32, i32) {
    %c0_i32 = arith.constant 0 : i32
    %c0_i32_0 = arith.constant 0 : i32
    %c0_i32_1 = arith.constant 0 : i32
    return %c0_i32, %c0_i32_0 : i32, i32
  }
  func.func @transform_7(%arg0: i32) -> (i32, i32, i32) {
    %c0_i32 = arith.constant 0 : i32
    %c0_i32_0 = arith.constant 0 : i32
    %c0_i32_1 = arith.constant 0 : i32
    return %arg0, %c0_i32, %c0_i32_0 : i32, i32, i32
  }
}

</mosaic_0001>

<bundles_post_ra>
// kernel: tpu_custom_call.1
= control target key start
LH: loop header
LB: loop body
LE: loop exit
PB: predicated region body
PF: predicated region fallthrough
CT: control target
= control target key end

     0   :  { %12 = vsyncpa [#allocation5], 0  ;;  %s901_s0 = inlined_call_operand.vmem [shape: f32[2,4,16], index: 0, kind: input, shape index: {}]   ;;  %s902_s1 = inlined_call_operand.vmem [shape: f32[3,8,4], index: 1, kind: input, shape index: {}]   ;;  %s903_s2 = inlined_call_operand.vmem [shape: f32[8,1], index: 2, kind: input, shape index: {}]   ;;  %s904_s3 = inlined_call_operand.vmem [shape: f32[3,8,8], index: 3, kind: input, shape index: {}]   ;;  %s905_s4 = inlined_call_operand.vmem [shape: f32[8,1], index: 4, kind: input, shape index: {}]   ;;  %s906_s5 = inlined_call_operand.vmem [shape: f32[8,4], index: 5, kind: input, shape index: {}]   ;;  %s907_s6 = inlined_call_operand.vmem [shape: f32[8,1], index: 6, kind: input, shape index: {}]   ;;  %s908_s7 = inlined_call_operand.hbm [shape: f32[2,8,16], index: 7, kind: output, shape index: {}]  }
   0x1   :  { %14 = vsyncpa [#allocation5 + $0x1], 0  ;;  %s772_s24 = smov 0   ;;  %s774_s25 = smov 0  }
   0x2   :  { %s776_s26 = smov 0   ;;  %s778_s27 = smov 0  }
   0x3 LB: > { %s793_s28 = sadd.s32 4294967295, %s725_s27   ;;  %s591_s29 = sadd.s32 4294967294, %s725_s27   ;;  %s725_s27 = sphi %s778_s27, %s914_s27   ;;  %s721_s26 = sphi %s776_s26, %s913_s26   ;;  %s717_s25 = sphi %s774_s25, %s912_s25   ;;  %s713_s24 = sphi %s772_s24, %s911_s24  }
   0x4   : > { %s797_s30 = sadd.s32 1, %s725_s27   ;;  %s179_s8 = sadd.s32 1, %s721_s26 }
   0x5   : > { %s176_s9 = ssub.s32 %s725_s27, %s797_s30  ;;  %p189_p0 = scmp.ne.s32.totalorder %s721_s26, %s717_s25 }
   0x6   : > { %p177_p1 = scmp.eq.s32.totalorder %s176_s9, 0  ;;  %p190_p2 = scmp.eq.s32.totalorder %s793_s28, 1 }
   0x7   : > { %p195_p3 = scmp.ne.s32.totalorder %s717_s25, %s713_s24  ;;  %p196_p4 = scmp.eq.s32.totalorder %s591_s29, 1 }
   0x8   : > { %s808_s10 = scalar_select %p177_p1, %s721_s26, %s179_s8  }
   0x9   : > { %p810_p5 = por %p190_p2, %p189_p0  ;;  %p814_p6 = por %p196_p4, %p195_p3 }
   0xa   : > { %p594_p7 = scmp.ge.s32.totalorder %s725_s27, 1  ;;  %p239_p8 = scmp.lt.s32.totalorder %s725_s27, 3 }
   0xc   : > { %p240_p9 = pnand %p594_p7, %p239_p8 }
   0xd   : > { %p270_p10 = scmp.lt.s32.totalorder (!%p240_p9), %s793_s28, 1  ;;  %s728_s18 = smov (!%p240_p9), 4  }
   0xe   : > { %243 = sbr.rel (%p240_p9) target bundleno = 755 (0x2f3), region = 48  ;;  %s729_s19 = smov (!%p240_p9), 126  }
   0xf   : > { %s730_s20 = smov (!%p240_p9), 124   ;;  %s613_s15 = sshll.u32 (!%p240_p9), %s793_s28, 3 }
  0x10   : > { %s527_s21 = scalar_lea.hbm (!%p240_p9), %s908_s7, %s613_s15  ;;  %s683_s9 = scalar_lea.hbm (!%p240_p9), %s908_s7, 16 }
  0x13   : > { %vm275_vm0 = vcmask 158720   ;;  %v727_v0 = vmov 0.0   ;;  %s271_s13 = scalar_select %p270_p10, %s793_s28, 1  ;;  %vm281_vm1 = vcmask 158752   ;;  %vm294_vm2 = vcmask 1043456   ;;  %v283_v4 = vld [vmem:[%s902_s1] sm:$0xff] }
  0x14   : > { %276 = vst.msk [vmem:[#allocation2] sm:$0xf] %vm275_vm0, %v727_v0  ;;  %vm290_vm3 = vcmask 31744   ;;  %v372_v5 = vld [vmem:[%s903_s2] sm:$0xff]  ;;  %v731_v6 = vmov 0   ;;  %v602_v8 = vld [vmem:[%s902_s1 + $0x10] sm:$0xff] }
  0x15   : > { %s596_s14 = sshll.u32 %s271_s13, 2  ;;  %660 = vset.pattern.permute.xlu1 %v731_v6  ;;  %661 = vset.pattern.permute.xlu2 %v731_v6  ;;  %v472_v7 = vld [vmem:[%s905_s4] sm:$0xff]  ;;  %v597_v9 = vld [vmem:[%s902_s1 + $0x8] sm:$0xff]  ;;  %vm380_vm4 = vcmask 162816   ;;  %vm386_vm5 = vcmask 162848   ;;  %vm396_vm6 = vcmask 64512  }
  0x16   : > { %s273_s17 = scalar_lea.vmem %s901_s0, %s596_s14  ;;  %662 = vset.pattern.permute.xlu0 %v731_v6  ;;  %381 = vst.msk [vmem:[#allocation3] sm:$0xff] %vm380_vm4, %v727_v0  ;;  %v480_v22 = vld [vmem:[%s906_s5] sm:$0xff]  ;;  %v605_v25 = vld [vmem:[%s904_s3 + $0x8] sm:$0xff]  ;;  %v608_v27 = vld [vmem:[%s904_s3 + $0x10] sm:$0xff]  ;;  %s267_s13 = sand.u32 1, %s717_s25   ;;  %vm514_vm7 = vcmask 130048  }
  0x17   : > { %v274_v1 = vld [vmem:[%s273_s17] sm:$0xf]  ;;  %s595_s14 = sshll.u32 %s267_s13, 3  ;;  %s517_s28 = scalar_lea.sflag [#allocation5], %s267_s13 }
  0x18   : > { %278 = vrot.lane.b32.xlu0 %v274_v1, %s728_s18  ;;  %v388_v23 = vld [vmem:[%s904_s3] sm:$0xff]  ;;  %s269_s22 = scalar_lea.vmem [#allocation4], %s595_s14 }
  0x19   : > { %v481_v24 = vld [vmem:[%s907_s6] sm:$0xff]  ;;  %s529_s23 = sshll.u32 %s269_s22, 4  ;;  %s530_s23 = int_to_ptr.vmem [resolvable:$true] %s529_s23 }
  0x8a   : > { %v279_v2 = vpop.permute.xlu0 %278 }
  0x8b   : > { %282 = vst.msk [vmem:[#allocation2] sm:$0xf] %vm281_vm1, %v279_v2 }
  0x92   : > { %v284_v3 = vld [vmem:[#allocation2] sm:$0xf] }
  0x93   : > { %288 = vrot.lane.b32.xlu1 %v284_v3, %s729_s19  ;;  %344 = vrot.lane.b32.xlu0 %v284_v3, %s730_s20 }
  0x94   : > { %600 = vmatpush.msk.msra.mxu1 %vm294_vm2, %v284_v3 }
  0x95   : > { %601 = vmatmul.msk.f32.vlgmr.msra.gmra.mxu1 %vm290_vm3, %v283_v4 }
  0x9b   : > { %375 = vperm.xlu1 %660, %v372_v5  }
  0xa3   : > { %475 = vperm.xlu1 %660, %v472_v7  }
 0x105   : > { %v289_v10 = vpop.permute.xlu1 %288  ;;  %v345_v11 = vpop.permute.xlu0 %344 }
 0x106   : > { %598 = vmatpush.msk.msra.mxu0 %vm294_vm2, %v289_v10  ;;  %603 = vmatpush.msk.msra.mxu2 %vm294_vm2, %v345_v11 }
 0x107   : > { %604 = vmatmul.msk.f32.vlgmr.msra.gmra.mxu2 %vm290_vm3, %v602_v8  ;;  %599 = vmatmul.msk.f32.vlgmr.msra.gmra.mxu0 %vm290_vm3, %v597_v9 }
 0x108   : > { %610 = vmatpush.msk.msrb.mxu2 %vm294_vm2, %v274_v1 }
 0x10d   : > { %v376_v17 = vpop.permute.xlu1 %375 }
 0x10f   : > { %611 = vmatmul.msk.f32.vlgmr.msrb.gmra.mxu2 %vm290_vm3, %v480_v22 }
 0x112   : > { %v339_v13 = vpop.f32.mrf.mxu1 }
 0x115   : > { %v476_v36 = vpop.permute.xlu1 %475 }
 0x184   : > { %v314_v12 = vpop.f32.mrf.mxu0 }
 0x185   : > { %v340_v14 = vadd.f32 %v339_v13, %v314_v12 }
 0x18a   : > { %v368_v15 = vpop.f32.mrf.mxu2 }
 0x18b   : > { %v371_v16 = vadd.f32 %v368_v15, %v340_v14 }
 0x18d   : > { %v378_v18 = vadd.f32 %v376_v17, %v371_v16 }
 0x18f   : > { %v379_v19 = vmax.f32 %v378_v18, 0.0 }
 0x191   : > { %383 = vrot.lane.b32.xlu2 %v379_v19, %s728_s18  ;;  %s531_s18 = sshll.u32 %s527_s21, 4  ;;  %s532_s18 = int_to_ptr.hbm [resolvable:$true] %s531_s18 }
 0x192   : > { %v509_v32 = vpop.f32.mrf.mxu2  ;;  %s677_s29 = sshra.s32 %s532_s18, 4  ;;  %s678_s29 = int_to_ptr.hbm [resolvable:$true] %s677_s29 }
 0x193   : > { %p684_p0 = scmp.lt.s32.totalorder %s678_s29, %s908_s7 }
 0x1eb   : > { %v384_v20 = vpop.permute.xlu2 %383 }
 0x1ec   : > { %387 = vst.msk [vmem:[#allocation3] sm:$0xff] %vm386_vm5, %v384_v20 }
 0x1f3   : > { %v389_v21 = vld [vmem:[#allocation3] sm:$0xff] }
 0x1f4   : > { %445 = vrot.lane.b32.xlu0 %v389_v21, %s730_s20  ;;  %393 = vrot.lane.b32.xlu2 %v389_v21, %s729_s19  ;;  %s679_s19 = scalar_lea.hbm %s678_s29, 8 }
 0x1f5   : > { %438 = vmatpush.msrb.mxu0 %v389_v21  ;;  %p680_p11 = scmp.ne.s32.totalorder %s678_s29, %s679_s19  ;;  %p685_p1 = scmp.lt.s32.totalorder %s683_s9, %s679_s19 }
 0x1f6   : > { %607 = vmatmul.msk.f32.vlgmr.msrb.gmra.mxu0 %vm396_vm6, %v388_v23 }
 0x1f7   : > { %p681_p12 = pnand %p680_p11, %p810_p5  ;;  %p686_p2 = por %p685_p1, %p684_p0 }
 0x1f9   : > { %p682_p13 = pneg %p681_p12 }
 0x1fb   : > { %p687_p3 = pnand %p686_p2, %p682_p13 }
 0x1fc   : > { %484 = vperm.xlu2 %661, %v481_v24  }
 0x24e   : > { %v394_v26 = vpop.permute.xlu2 %393 }
 0x24f   : > { %415 = vmatpush.msra.mxu3 %v394_v26 }
 0x250   : > { %606 = vmatmul.msk.f32.vlgmr.msra.gmra.mxu3 %vm396_vm6, %v605_v25 }
 0x256   : > { %v485_v34 = vpop.permute.xlu2 %484 }
 0x257   : > { %v510_v38 = vadd.f32 %v509_v32, %v485_v34 }
 0x266   : > { %v446_v28 = vpop.permute.xlu0 %445 }
 0x267   : > { %466 = vmatpush.msrb.mxu1 %v446_v28 }
 0x268   : > { %609 = vmatmul.msk.f32.vlgmr.msrb.gmra.mxu1 %vm396_vm6, %v608_v27 }
 0x273   : > { %v440_v30 = vpop.f32.mrf.mxu0 }
 0x2d3   : > { %v417_v29 = vpop.f32.mrf.mxu3 }
 0x2d4   : > { %v441_v31 = vadd.f32 %v440_v30, %v417_v29 }
 0x2e5   : > { %v468_v33 = vpop.f32.mrf.mxu1 }
 0x2e6   : > { %v471_v35 = vadd.f32 %v468_v33, %v441_v31 }
 0x2e8   : > { %v478_v37 = vadd.f32 %v476_v36, %v471_v35 }
 0x2ea   : > { %v479_v39 = vmax.f32 %v478_v37, 0.0 }
 0x2ec   : > { %v512_v40 = vadd.f32 %v510_v38, %v479_v39 }
 0x2ee   : > { %v513_v41 = vmax.f32 %v512_v40, 0.0 }
 0x2f0   : > { %515 = vst.msk [vmem:[%s269_s22] sm:$0xff] %vm514_vm7, %v513_v41 }
 0x2f1   : > { %690 = shalt.err (!%p687_p3)
}
 0x2f2   : > { %616 = dma.vmem_to_hbm [thread:$0]  (%p810_p5), %s530_s23, 128, %s532_s18, %s517_s28  }
 0x2f3 PF: > { %p622_p4 = scmp.ge.s32.totalorder %s725_s27, 2  ;;  %s543_s13 = sand.u32 1, %s713_s24  }
 0x2f4   : > { %s544_s16 = scalar_lea.sflag [#allocation5], %s543_s13 }
 0x2f5   : > { %p619_p7 = pnand %p622_p4, %p814_p6 }
 0x2f7   : > { %p620_p8 = pneg %p619_p7 }
 0x2f9   : > { %708 = dma.done.wait (%p620_p8), %s544_s16, 128  }
 0x2fa   : > { %710 = vsyncadd (%p620_p8), %s544_s16, 4294967168  ;;  %p17_p9 = scmp.ge.s32.totalorder %s797_s30, 4   ;;  %s911_s24 = smov %s717_s25 }
 0x2fb   : > { %s912_s25 = smov %s721_s26  ;;  %s913_s26 = smov %s808_s10 }
 0x2fc   : > { %s914_s27 = smov %s797_s30  ;;  %19 = sbr.rel (!%p17_p9) target bundleno = 3 (0x3), region = 87 }
 0x301   :  { %550 = vsyncpa [#allocation5], 1 }
 0x302   :  { %552 = vsyncpa [#allocation5 + $0x1], 1 }

</bundles_post_ra>
